<compile_context>
chip_gen: v7x
topology: tpu7x:2x2x1
jax: 0.10.0
libtpu: 0.0.40
codegen_flags: <defaults>
</compile_context>

<pallas_src>
import functools

import jax
import jax.numpy as jnp
from jax.experimental import pallas as pl
from jax.experimental.pallas import tpu as pltpu


def _round_up(x, m):
    return ((x + m - 1) // m) * m


def _dnn_kernel(x_ref, *refs):
    """Fused MLP forward for one batch tile, batch-on-lanes layout.

    x_ref:   [d_in_pad, tile_b]   (features on sublanes, batch on lanes)
    refs  =  (w0, b0, w1, b1, ..., w_{L-1}, b_{L-1}, out_ref)
      w_i:   [out_pad_i, in_pad_i]  (PyTorch-native [out, in], zero-padded)
      b_i:   [out_pad_i, 1]
    out_ref: [d_out_pad, tile_b]
    Hidden layers apply tanh (EUP); the last layer is linear.
    """
    out_ref = refs[-1]
    param_refs = refs[:-1]
    n_layers = len(param_refs) // 2

    h = x_ref[...]
    for li in range(n_layers):
        w = param_refs[2 * li][...]
        b = param_refs[2 * li + 1][...]
        # f32 operands, f32 accumulation (default MXU precision matches the
        # pure-JAX reference at 1e-5 here; swap to bf16 operands or
        # precision=HIGHEST depending on the PINN accuracy/perf tradeoff).
        h = jnp.dot(w, h, preferred_element_type=jnp.float32) + b
        if li < n_layers - 1:
            h = jnp.tanh(h)
    out_ref[...] = h.astype(out_ref.dtype)


@functools.partial(jax.jit, static_argnames=("tile_b",))
def dnn_forward(x, weights, biases, *, tile_b=512):
    """DNN forward pass with a Pallas kernel, batch mapped to lanes.

    Args:
      x:       [N, d_in] float32 input.
      weights: list of [out_i, in_i] float32 weights (PyTorch nn.Linear layout).
      biases:  list of [out_i] float32 biases.
      tile_b:  preferred batch (lane) tile size; clipped / rounded internally.

    Returns:
      [N, d_out] float32, identical semantics to the PyTorch DNN forward.
    """
    n, d_in = x.shape
    d_out = weights[-1].shape[0]

    # Lane-dense batch tiling; pad the batch instead of asserting divisibility.
    tile_b_eff = _round_up(min(tile_b, _round_up(n, 128)), 128)
    n_pad = _round_up(n, tile_b_eff)
    grid = (n_pad // tile_b_eff,)

    # Transpose so batch occupies the 128-wide lane axis; pad the tiny feature
    # dim up to a full sublane group.
    d_in_pad = _round_up(d_in, 8)
    xT = jnp.zeros((d_in_pad, n_pad), jnp.float32).at[:d_in, :n].set(x.T)

    params = []
    in_specs = [pl.BlockSpec((d_in_pad, tile_b_eff), lambda i: (0, i))]
    for w, b in zip(weights, biases):
        o, k = w.shape
        o_pad, k_pad = _round_up(o, 8), _round_up(k, 8)
        w_pad = jnp.zeros((o_pad, k_pad), jnp.float32).at[:o, :k].set(w)
        b_pad = jnp.zeros((o_pad, 1), jnp.float32).at[:o, 0].set(b)
        # Grid-invariant parameters: whole-array VMEM residents (single
        # buffer, no per-grid-step DMA / double-buffering).
        in_specs.append(pl.BlockSpec(memory_space=pltpu.MemorySpace.VMEM))
        in_specs.append(pl.BlockSpec(memory_space=pltpu.MemorySpace.VMEM))
        params.extend([w_pad, b_pad])

    d_out_pad = _round_up(d_out, 8)
    out_spec = pl.BlockSpec((d_out_pad, tile_b_eff), lambda i: (0, i))

    outT = pl.pallas_call(
        _dnn_kernel,
        out_shape=jax.ShapeDtypeStruct((d_out_pad, n_pad), jnp.float32),
        grid_spec=pltpu.PrefetchScalarGridSpec(
            num_scalar_prefetch=0,
            grid=grid,
            in_specs=in_specs,
            out_specs=out_spec,
        ),
        compiler_params=pltpu.CompilerParams(
            # Batch tiles are independent -> megacore sharding on v7x.
            dimension_semantics=("parallel",)),
    )(xT, *params)

    # Drop padding and return the PyTorch-shaped [N, d_out] result.
    return outT[:d_out, :n].T


def init_dnn_params(layers, key):
    """PyTorch nn.Linear-style init: U(-1/sqrt(fan_in), 1/sqrt(fan_in))."""
    weights, biases = [], []
    for i in range(len(layers) - 1):
        fan_in, fan_out = layers[i], layers[i + 1]
        key, kw, kb = jax.random.split(key, 3)
        bound = 1.0 / jnp.sqrt(jnp.float32(fan_in))
        w = jax.random.uniform(kw, (fan_out, fan_in), jnp.float32,
                               minval=-bound, maxval=bound)
        b = jax.random.uniform(kb, (fan_out,), jnp.float32,
                               minval=-bound, maxval=bound)
        weights.append(w)
        biases.append(b)
    return weights, biases


def dnn_reference(x, weights, biases):
    """Pure-JAX reference matching the PyTorch forward semantics."""
    h = x
    n_layers = len(weights)
    for i, (w, b) in enumerate(zip(weights, biases)):
        h = h @ w.T + b
        if i < n_layers - 1:
            h = jnp.tanh(h)
    return h


if __name__ == "__main__":
    # Burgers PINN architecture at small scale: input (x, t) -> 1 output.
    layers = [2, 32, 32, 32, 1]
    batch = 300  # deliberately not tile-aligned: exercises batch padding

    key = jax.random.PRNGKey(0)
    key, kx = jax.random.split(key)
    x = jax.random.normal(kx, (batch, layers[0]), jnp.float32)

    weights, biases = init_dnn_params(layers, key)

    # tile_b=128 here -> 3 grid steps on the padded batch (multi-tile path).
    out = dnn_forward(x, weights, biases, tile_b=128)
    out = jax.block_until_ready(out)

    ref = dnn_reference(x, weights, biases)
    assert out.shape == (batch, layers[-1])
    assert jnp.allclose(out, ref, atol=1e-5, rtol=1e-5), "mismatch vs reference"

    print("KERNEL_OK")
</pallas_src>

<mosaic_0001>
module attributes {stable_mosaic.version = 11 : i64} {
  func.func @_dnn_kernel(%arg0: i32, %arg1: memref<8x128xf32, #tpu.memory_space<vmem>>, %arg2: memref<32x8xf32, #tpu.memory_space<vmem>>, %arg3: memref<32x1xf32, #tpu.memory_space<vmem>>, %arg4: memref<32x32xf32, #tpu.memory_space<vmem>>, %arg5: memref<32x1xf32, #tpu.memory_space<vmem>>, %arg6: memref<32x32xf32, #tpu.memory_space<vmem>>, %arg7: memref<32x1xf32, #tpu.memory_space<vmem>>, %arg8: memref<8x32xf32, #tpu.memory_space<vmem>>, %arg9: memref<8x1xf32, #tpu.memory_space<vmem>>, %arg10: memref<8x128xf32, #tpu.memory_space<vmem>>) attributes {dimension_semantics = [#tpu.dimension_semantics<parallel>], iteration_bounds = array<i64: 3>, scalar_prefetch = 0 : i64, scratch_operands = 0 : i64, tpu.core_type = #tpu.core_type<tc>, window_params = [{transform_indices = @transform_0, window_bounds = array<i64: 8, 128>}, {pipeline_mode = #tpu.pipeline_mode<synchronous>, transform_indices = @transform_1, window_bounds = array<i64: 32, 8>}, {pipeline_mode = #tpu.pipeline_mode<synchronous>, transform_indices = @transform_2, window_bounds = array<i64: 32, 1>}, {pipeline_mode = #tpu.pipeline_mode<synchronous>, transform_indices = @transform_3, window_bounds = array<i64: 32, 32>}, {pipeline_mode = #tpu.pipeline_mode<synchronous>, transform_indices = @transform_4, window_bounds = array<i64: 32, 1>}, {pipeline_mode = #tpu.pipeline_mode<synchronous>, transform_indices = @transform_5, window_bounds = array<i64: 32, 32>}, {pipeline_mode = #tpu.pipeline_mode<synchronous>, transform_indices = @transform_6, window_bounds = array<i64: 32, 1>}, {pipeline_mode = #tpu.pipeline_mode<synchronous>, transform_indices = @transform_7, window_bounds = array<i64: 8, 32>}, {pipeline_mode = #tpu.pipeline_mode<synchronous>, transform_indices = @transform_8, window_bounds = array<i64: 8, 1>}, {transform_indices = @transform_9, window_bounds = array<i64: 8, 128>}]} {
    %c0 = arith.constant 0 : index
    %c0_0 = arith.constant 0 : index
    %0 = vector.load %arg1[%c0, %c0_0] : memref<8x128xf32, #tpu.memory_space<vmem>>, vector<8x128xf32>
    %c0_1 = arith.constant 0 : index
    %c0_2 = arith.constant 0 : index
    %1 = vector.load %arg2[%c0_1, %c0_2] : memref<32x8xf32, #tpu.memory_space<vmem>>, vector<32x8xf32>
    %c0_3 = arith.constant 0 : index
    %c0_4 = arith.constant 0 : index
    %2 = vector.load %arg3[%c0_3, %c0_4] : memref<32x1xf32, #tpu.memory_space<vmem>>, vector<32x1xf32>
    %cst = arith.constant dense<0.000000e+00> : vector<32x128xf32>
    %3 = tpu.matmul %1, %0, %cst {dimension_numbers = #tpu.dot_dimension_numbers<[1], [0], [0], [1], [0, 0, 1, 1], [], []>} : vector<32x8xf32>, vector<8x128xf32>, vector<32x128xf32> -> vector<32x128xf32>
    %4 = vector.broadcast %2 : vector<32x1xf32> to vector<32x128xf32>
    %5 = arith.addf %3, %4 : vector<32x128xf32>
    %6 = math.tanh %5 : vector<32x128xf32>
    %c0_5 = arith.constant 0 : index
    %c0_6 = arith.constant 0 : index
    %7 = vector.load %arg4[%c0_5, %c0_6] : memref<32x32xf32, #tpu.memory_space<vmem>>, vector<32x32xf32>
    %c0_7 = arith.constant 0 : index
    %c0_8 = arith.constant 0 : index
    %8 = vector.load %arg5[%c0_7, %c0_8] : memref<32x1xf32, #tpu.memory_space<vmem>>, vector<32x1xf32>
    %cst_9 = arith.constant dense<0.000000e+00> : vector<32x128xf32>
    %9 = tpu.matmul %7, %6, %cst_9 {dimension_numbers = #tpu.dot_dimension_numbers<[1], [0], [0], [1], [0, 0, 1, 1], [], []>} : vector<32x32xf32>, vector<32x128xf32>, vector<32x128xf32> -> vector<32x128xf32>
    %10 = vector.broadcast %8 : vector<32x1xf32> to vector<32x128xf32>
    %11 = arith.addf %9, %10 : vector<32x128xf32>
    %12 = math.tanh %11 : vector<32x128xf32>
    %c0_10 = arith.constant 0 : index
    %c0_11 = arith.constant 0 : index
    %13 = vector.load %arg6[%c0_10, %c0_11] : memref<32x32xf32, #tpu.memory_space<vmem>>, vector<32x32xf32>
    %c0_12 = arith.constant 0 : index
    %c0_13 = arith.constant 0 : index
    %14 = vector.load %arg7[%c0_12, %c0_13] : memref<32x1xf32, #tpu.memory_space<vmem>>, vector<32x1xf32>
    %cst_14 = arith.constant dense<0.000000e+00> : vector<32x128xf32>
    %15 = tpu.matmul %13, %12, %cst_14 {dimension_numbers = #tpu.dot_dimension_numbers<[1], [0], [0], [1], [0, 0, 1, 1], [], []>} : vector<32x32xf32>, vector<32x128xf32>, vector<32x128xf32> -> vector<32x128xf32>
    %16 = vector.broadcast %14 : vector<32x1xf32> to vector<32x128xf32>
    %17 = arith.addf %15, %16 : vector<32x128xf32>
    %18 = math.tanh %17 : vector<32x128xf32>
    %c0_15 = arith.constant 0 : index
    %c0_16 = arith.constant 0 : index
    %19 = vector.load %arg8[%c0_15, %c0_16] : memref<8x32xf32, #tpu.memory_space<vmem>>, vector<8x32xf32>
    %c0_17 = arith.constant 0 : index
    %c0_18 = arith.constant 0 : index
    %20 = vector.load %arg9[%c0_17, %c0_18] : memref<8x1xf32, #tpu.memory_space<vmem>>, vector<8x1xf32>
    %cst_19 = arith.constant dense<0.000000e+00> : vector<8x128xf32>
    %21 = tpu.matmul %19, %18, %cst_19 {dimension_numbers = #tpu.dot_dimension_numbers<[1], [0], [0], [1], [0, 0, 1, 1], [], []>} : vector<8x32xf32>, vector<32x128xf32>, vector<8x128xf32> -> vector<8x128xf32>
    %22 = vector.broadcast %20 : vector<8x1xf32> to vector<8x128xf32>
    %23 = arith.addf %21, %22 : vector<8x128xf32>
    %c0_20 = arith.constant 0 : index
    %c0_21 = arith.constant 0 : index
    %24 = vector.load %arg10[%c0_20, %c0_21] : memref<8x128xf32, #tpu.memory_space<vmem>>, vector<8x128xf32>
    tpu.vector_store %arg10[%c0_20, %c0_21], %23 {strides = array<i32>} : memref<8x128xf32, #tpu.memory_space<vmem>>, vector<8x128xf32>,
    return
  }
  func.func @transform_0(%arg0: i32) -> (i32, i32) {
    %c0_i32 = arith.constant 0 : i32
    %c0_i32_0 = arith.constant 0 : i32
    return %c0_i32, %arg0 : i32, i32
  }
  func.func @transform_1(%arg0: i32) -> (i32, i32) {
    %c0_i32 = arith.constant 0 : i32
    %c0_i32_0 = arith.constant 0 : i32
    %c0_i32_1 = arith.constant 0 : i32
    return %c0_i32, %c0_i32_0 : i32, i32
  }
  func.func @transform_2(%arg0: i32) -> (i32, i32) {
    %c0_i32 = arith.constant 0 : i32
    %c0_i32_0 = arith.constant 0 : i32
    %c0_i32_1 = arith.constant 0 : i32
    return %c0_i32, %c0_i32_0 : i32, i32
  }
  func.func @transform_3(%arg0: i32) -> (i32, i32) {
    %c0_i32 = arith.constant 0 : i32
    %c0_i32_0 = arith.constant 0 : i32
    %c0_i32_1 = arith.constant 0 : i32
    return %c0_i32, %c0_i32_0 : i32, i32
  }
  func.func @transform_4(%arg0: i32) -> (i32, i32) {
    %c0_i32 = arith.constant 0 : i32
    %c0_i32_0 = arith.constant 0 : i32
    %c0_i32_1 = arith.constant 0 : i32
    return %c0_i32, %c0_i32_0 : i32, i32
  }
  func.func @transform_5(%arg0: i32) -> (i32, i32) {
    %c0_i32 = arith.constant 0 : i32
    %c0_i32_0 = arith.constant 0 : i32
    %c0_i32_1 = arith.constant 0 : i32
    return %c0_i32, %c0_i32_0 : i32, i32
  }
  func.func @transform_6(%arg0: i32) -> (i32, i32) {
    %c0_i32 = arith.constant 0 : i32
    %c0_i32_0 = arith.constant 0 : i32
    %c0_i32_1 = arith.constant 0 : i32
    return %c0_i32, %c0_i32_0 : i32, i32
  }
  func.func @transform_7(%arg0: i32) -> (i32, i32) {
    %c0_i32 = arith.constant 0 : i32
    %c0_i32_0 = arith.constant 0 : i32
    %c0_i32_1 = arith.constant 0 : i32
    return %c0_i32, %c0_i32_0 : i32, i32
  }
  func.func @transform_8(%arg0: i32) -> (i32, i32) {
    %c0_i32 = arith.constant 0 : i32
    %c0_i32_0 = arith.constant 0 : i32
    %c0_i32_1 = arith.constant 0 : i32
    return %c0_i32, %c0_i32_0 : i32, i32
  }
  func.func @transform_9(%arg0: i32) -> (i32, i32) {
    %c0_i32 = arith.constant 0 : i32
    %c0_i32_0 = arith.constant 0 : i32
    return %c0_i32, %arg0 : i32, i32
  }
}

</mosaic_0001>

<bundles_post_ra>
// kernel: dnn_forward.1
= control target key start
LH: loop header
LB: loop body
LE: loop exit
PB: predicated region body
PF: predicated region fallthrough
CT: control target
= control target key end

     0   :  { %s1069_s30 = smov 0   ;;  %s1184_s0 = inlined_call_operand.vmem [shape: f32[8,384], index: 0, kind: input, shape index: {}]   ;;  %s1185_s1 = inlined_call_operand.vmem [shape: f32[32,8], index: 1, kind: input, shape index: {}]   ;;  %s1186_s2 = inlined_call_operand.vmem [shape: f32[32,1], index: 2, kind: input, shape index: {}]   ;;  %s1187_s3 = inlined_call_operand.vmem [shape: f32[32,32], index: 3, kind: input, shape index: {}]   ;;  %s1188_s4 = inlined_call_operand.vmem [shape: f32[32,1], index: 4, kind: input, shape index: {}]   ;;  %s1189_s5 = inlined_call_operand.vmem [shape: f32[32,32], index: 5, kind: input, shape index: {}]   ;;  %s1190_s6 = inlined_call_operand.vmem [shape: f32[32,1], index: 6, kind: input, shape index: {}]   ;;  %s1191_s7 = inlined_call_operand.vmem [shape: f32[8,32], index: 7, kind: input, shape index: {}]   ;;  %s1192_s8 = inlined_call_operand.vmem [shape: f32[8,1], index: 8, kind: input, shape index: {}]   ;;  %s1193_s9 = inlined_call_operand.vmem [shape: f32[8,384], index: 9, kind: output, shape index: {}]  }
   0x1 LB: > { %s852_s10 = sadd.s32 4294967295, %s1013_s30   ;;  %p856_p0 = scmp.ge.s32.totalorder %s1013_s30, 1  ;;  %s1013_s30 = sphi %s1069_s30, %s19_s30  }
   0x2   : > { %p286_p1 = scmp.lt.s32.totalorder %s1013_s30, 4 }
   0x4   : > { %p287_p2 = pnand %p856_p0, %p286_p1 }
   0x5   : > { %p320_p3 = scmp.lt.s32.totalorder (!%p287_p2), %s852_s10, 2  ;;  %v329_v0 = vld [vmem:[%s1185_s1] sm:$0xff] (!%p287_p2)  ;;  %vm357_vm0 = vcmask (!%p287_p2), 64512   ;;  %v1015_v1 = vmov (!%p287_p2), 0   ;;  %v335_v3 = vld [vmem:[%s1186_s2 + $0x10] sm:$0xff] (!%p287_p2)  ;;  %v334_v4 = vld [vmem:[%s1186_s2 + $0x8] sm:$0xff] (!%p287_p2) }
   0x6   : > { %290 = sbr.rel (%p287_p2) target bundleno = 941 (0x3ad), region = 56  ;;  %902 = vmatprep.mubr.msk.f32.mxu0 (!%p287_p2), %vm357_vm0, %v329_v0  ;;  %981 = vset.pattern.permute.xlu0 (!%p287_p2), %v1015_v1  ;;  %v333_v2 = vld [vmem:[%s1186_s2] sm:$0xff] (!%p287_p2)  ;;  %v336_v5 = vld [vmem:[%s1186_s2 + $0x18] sm:$0xff] (!%p287_p2)  ;;  %v330_v7 = vld [vmem:[%s1185_s1 + $0x8] sm:$0xff] (!%p287_p2)  ;;  %vm487_vm1 = vcmask (!%p287_p2), 261120   ;;  %v1016_v63 = vmov (!%p287_p2), 0.0|0.0  }
   0x7   : > { %339 = vperm.xlu0 (!%p287_p2), %981, %v333_v2   ;;  %982 = vset.pattern.permute.xlu1 (!%p287_p2), %v1015_v1  ;;  %v331_v8 = vld [vmem:[%s1185_s1 + $0x10] sm:$0xff] (!%p287_p2)  ;;  %v463_v9 = vld [vmem:[%s1188_s4] sm:$0xff] (!%p287_p2)  ;;  %v464_v10 = vld [vmem:[%s1188_s4 + $0x8] sm:$0xff] (!%p287_p2)  ;;  %vm1017_vm2 = vmmov (!%p287_p2), 0   ;;  %v1018_v0 = vmov (!%p287_p2), 0.0  }
   0x8   : > { %349 = vperm.xlu1 (!%p287_p2), %982, %v335_v3   ;;  %v332_v11 = vld [vmem:[%s1185_s1 + $0x18] sm:$0xff] (!%p287_p2)  ;;  %v465_v12 = vld [vmem:[%s1188_s4 + $0x10] sm:$0xff] (!%p287_p2)  ;;  %v593_v14 = vld [vmem:[%s1190_s6] sm:$0xff] (!%p287_p2) }
   0x9   : > { %v466_v13 = vld [vmem:[%s1188_s4 + $0x18] sm:$0xff] (!%p287_p2)  ;;  %v594_v15 = vld [vmem:[%s1190_s6 + $0x8] sm:$0xff] (!%p287_p2)  ;;  %v595_v16 = vld [vmem:[%s1190_s6 + $0x10] sm:$0xff] (!%p287_p2) }
   0xa   : > { %v596_v17 = vld [vmem:[%s1190_s6 + $0x18] sm:$0xff] (!%p287_p2)  ;;  %v719_v18 = vld [vmem:[%s1192_s8] sm:$0xff] (!%p287_p2)  ;;  %v460_v38 = vld [vmem:[%s1187_s3 + $0x8] sm:$0xff] (!%p287_p2) }
   0xb   : > { %344 = vperm.xlu0 (!%p287_p2), %981, %v334_v4   ;;  %v459_v19 = vld [vmem:[%s1187_s3] sm:$0xff] (!%p287_p2)  ;;  %v461_v39 = vld [vmem:[%s1187_s3 + $0x10] sm:$0xff] (!%p287_p2)  ;;  %v462_v40 = vld [vmem:[%s1187_s3 + $0x18] sm:$0xff] (!%p287_p2) }
   0xc   : > { %354 = vperm.xlu1 (!%p287_p2), %982, %v336_v5   ;;  %916 = vmatprep.mubr.msk.f32.mxu1 (!%p287_p2), %vm487_vm1, %v459_v19  ;;  %v589_v41 = vld [vmem:[%s1189_s5] sm:$0xff] (!%p287_p2)  ;;  %v590_v60 = vld [vmem:[%s1189_s5 + $0x8] sm:$0xff] (!%p287_p2)  ;;  %v591_v61 = vld [vmem:[%s1189_s5 + $0x10] sm:$0xff] (!%p287_p2) }
   0xd   : > { %s1195_s10 = smov (!%p320_p3, %s852_s10), 2  ;;  %v592_v62 = vld [vmem:[%s1189_s5 + $0x18] sm:$0xff]  ;;  %v718_v19 = vld [vmem:[%s1191_s7] sm:$0xff] }
   0xe   : > { %s857_s19 = sshll.u32 %s1195_s10, 3 }
   0xf   : > { %s323_s24 = scalar_lea.vmem %s1184_s0, %s857_s19  ;;  %469 = vperm.xlu0 %981, %v463_v9   ;;  %s327_s14 = scalar_lea.vmem %s1193_s9, %s857_s19 }
  0x10   : > { %v328_v6 = vld [vmem:[%s323_s24] sm:$0xff]  ;;  %474 = vperm.xlu1 %982, %v464_v10  }
  0x11   : > { %900 = vmatprep.subr.mxu0 %v328_v6 }
  0x12   : > { %901 = vmatpush3.msra.mxu0 %v328_v6 }
  0x13   : > { %903 = vmatmul.mubr.msk.f32.vlgmr.msra.gmra.mrb[0].mxu0 %vm357_vm0, %v330_v7  ;;  %479 = vperm.xlu0 %981, %v465_v12  }
  0x14   : > { %905 = vmatprep.mubr.msk.f32.mxu0 %vm357_vm0, %v331_v8  ;;  %484 = vperm.xlu1 %982, %v466_v13  }
  0x17   : > { %906 = vmatmul.mubr.msk.f32.gmra.mrb[2].mxu0 %vm357_vm0, %v332_v11  ;;  %599 = vperm.xlu0 %981, %v593_v14  }
  0x18   : > { %604 = vperm.xlu1 %982, %v594_v15   ;;  %930 = vmatprep.mubr.msk.f32.mxu0 %vm487_vm1, %v589_v41 }
  0x1b   : > { %609 = vperm.xlu0 %981, %v595_v16  }
  0x1c   : > { %614 = vperm.xlu1 %982, %v596_v17  }
  0x1f   : > { %722 = vperm.xlu0 %981, %v719_v18  }
  0x86   : > { %v340_v20 = vpop.permute.xlu0 %339 }
  0x87   : > { %v350_v21 = vpop.permute.xlu1 %349 }
  0x8a   : > { %v345_v22 = vpop.permute.xlu0 %344 }
  0x8b   : > { %v355_v27 = vpop.permute.xlu1 %354 }
  0x8e   : > { %v470_v43 = vpop.permute.xlu0 %469 }
  0x8f   : > { %v475_v42 = vpop.permute.xlu1 %474 }
  0x92   : > { %v480_v50 = vpop.permute.xlu0 %479 }
  0x93   : > { %v485_v48 = vpop.permute.xlu1 %484 }
  0x96   : > { %v600_v2 = vpop.permute.xlu0 %599 }
  0x97   : > { %v605_v1 = vpop.permute.xlu1 %604 }
  0x9a   : > { %v610_v9 = vpop.permute.xlu0 %609 }
  0x9b   : > { %v615_v7 = vpop.permute.xlu1 %614 }
  0xe6   : > { %v904_v23 = vpop.f32.mrb[0].mxu0 }
  0xe7   : > { %v442_v24 = vadd.f32 %v904_v23, %v345_v22  ;;  %v436_v25 = vpop.f32.mrb[1].mxu0 }
  0xe8   : > { %v437_v26 = vadd.f32 %v436_v25, %v340_v20  ;;  %v723_v20 = vpop.permute.xlu0 %722 }
  0xe9   : > { %983 = vtanh.f32 %v442_v24 }
  0xea   : > { %985 = vtanh.f32 %v437_v26  ;;  %v907_v28 = vpop.f32.mrb[2].mxu0 }
  0xeb   : > { %v452_v29 = vadd.f32 %v907_v28, %v355_v27  ;;  %v446_v30 = vpop.f32.mrb[3].mxu0 }
  0xec   : > { %v447_v31 = vadd.f32 %v446_v30, %v350_v21 }
  0xed   : > { %987 = vtanh.f32 %v452_v29 }
  0xee   : > { %989 = vtanh.f32 %v447_v31 }
  0xf3   : > { %v984_v32 = vpop.eup %983 }
  0xf4   : > { %v986_v33 = vpop.eup %985 }
  0xf5   : > { %v947_v34 = vpack.c.bf16 %v984_v32, %v986_v33 }
  0xf7   : > { %v988_v35 = vpop.eup %987  ;;  %948 = vmatprep.subr.bf16.mxu1 %v947_v34 }
  0xf8   : > { %v990_v36 = vpop.eup %989  ;;  %950 = vmatpush3.bf16.msra.mxu1 %v947_v34 }
  0xf9   : > { %v951_v37 = vpack.c.bf16 %v988_v35, %v990_v36 }
  0xfb   : > { %952 = vmatprep.subr.bf16.mxu1 %v951_v37 }
  0xfc   : > { %954 = vmatpush3.bf16.msra.mxu1 %v951_v37 }
  0xfd   : > { %963 = vmatprep.subr.bf16.mxu1 %v1016_v63 }
  0xff   : > { %917 = vmatmul.mubr.msk.f32.vlgmr.msra.gmra.mrb[0].mxu1 %vm487_vm1, %v460_v38 }
 0x100   : > { %919 = vmatprep.mubr.msk.f32.mxu1 %vm487_vm1, %v461_v39 }
 0x103   : > { %920 = vmatmul.mubr.msk.f32.gmra.mrb[2].mxu1 %vm487_vm1, %v462_v40 }
 0x104   : > { %944 = vmatprep.mubr.msk.f32.mxu1 %vm1017_vm2, %v1018_v0 }
 0x1d2   : > { %v918_v44 = vpop.f32.mrb[0].mxu1 }
 0x1d3   : > { %v572_v45 = vadd.f32 %v918_v44, %v475_v42  ;;  %v566_v46 = vpop.f32.mrb[1].mxu1 }
 0x1d4   : > { %v567_v47 = vadd.f32 %v566_v46, %v470_v43 }
 0x1d5   : > { %991 = vtanh.f32 %v572_v45 }
 0x1d6   : > { %993 = vtanh.f32 %v567_v47  ;;  %v921_v49 = vpop.f32.mrb[2].mxu1 }
 0x1d7   : > { %v582_v51 = vadd.f32 %v921_v49, %v485_v48  ;;  %v576_v52 = vpop.f32.mrb[3].mxu1 }
 0x1d8   : > { %v577_v53 = vadd.f32 %v576_v52, %v480_v50 }
 0x1d9   : > { %995 = vtanh.f32 %v582_v51 }
 0x1da   : > { %997 = vtanh.f32 %v577_v53 }
 0x1df   : > { %v992_v54 = vpop.eup %991 }
 0x1e0   : > { %v994_v55 = vpop.eup %993 }
 0x1e1   : > { %v955_v56 = vpack.c.bf16 %v992_v54, %v994_v55 }
 0x1e3   : > { %v996_v57 = vpop.eup %995  ;;  %956 = vmatprep.subr.bf16.mxu0 %v955_v56 }
 0x1e4   : > { %v998_v58 = vpop.eup %997  ;;  %958 = vmatpush3.bf16.msra.mxu0 %v955_v56 }
 0x1e5   : > { %v959_v59 = vpack.c.bf16 %v996_v57, %v998_v58 }
 0x1e7   : > { %960 = vmatprep.subr.bf16.mxu0 %v959_v59 }
 0x1e8   : > { %962 = vmatpush3.bf16.msra.mxu0 %v959_v59 }
 0x1eb   : > { %931 = vmatmul.mubr.msk.f32.vlgmr.msra.gmra.mrb[4].mxu0 %vm487_vm1, %v590_v60 }
 0x1ec   : > { %933 = vmatprep.mubr.msk.f32.mxu0 %vm487_vm1, %v591_v61 }
 0x1ef   : > { %934 = vmatmul.mubr.msk.f32.gmra.mrb[6].mxu0 %vm487_vm1, %v592_v62 }
 0x2be   : > { %v932_v3 = vpop.f32.mrb[4].mxu0 }
 0x2bf   : > { %v701_v4 = vadd.f32 %v932_v3, %v605_v1  ;;  %v695_v5 = vpop.f32.mrb[5].mxu0 }
 0x2c0   : > { %v696_v6 = vadd.f32 %v695_v5, %v600_v2 }
 0x2c1   : > { %999 = vtanh.f32 %v701_v4 }
 0x2c2   : > { %1001 = vtanh.f32 %v696_v6  ;;  %v935_v8 = vpop.f32.mrb[6].mxu0 }
 0x2c3   : > { %v711_v10 = vadd.f32 %v935_v8, %v615_v7  ;;  %v705_v11 = vpop.f32.mrb[7].mxu0 }
 0x2c4   : > { %v706_v12 = vadd.f32 %v705_v11, %v610_v9 }
 0x2c5   : > { %1003 = vtanh.f32 %v711_v10 }
 0x2c6   : > { %1005 = vtanh.f32 %v706_v12 }
 0x2cb   : > { %v1000_v13 = vpop.eup %999 }
 0x2cc   : > { %v1002_v14 = vpop.eup %1001 }
 0x2cd   : > { %v964_v15 = vpack.c.bf16 %v1000_v13, %v1002_v14 }
 0x2cf   : > { %v1004_v16 = vpop.eup %1003  ;;  %965 = vmatpush3.bf16.msra.mxu1 %v964_v15 }
 0x2d0   : > { %v1006_v17 = vpop.eup %1005  ;;  %966 = vmatprep.subr.bf16.mxu1 %v1016_v63 }
 0x2d1   : > { %v967_v18 = vpack.c.bf16 %v1004_v16, %v1006_v17 }
 0x2d3   : > { %968 = vmatpush3.bf16.msra.mxu1 %v967_v18 }
 0x2d6   : > { %945 = vmatmul.mubr.msk.f32.vlgmr.msra.gmra.mrb[4].mxu1 %vm487_vm1, %v718_v19 }
 0x3a9   : > { %v794_v21 = vpop.f32.mrb[4].mxu1 }
 0x3aa   : > { %v795_v22 = vadd.f32 %v794_v21, %v723_v20  ;;  %v946_v23 = vpop.f32.mrb[5].mxu1 }
 0x3ac   : > { %798 = vst [vmem:[%s327_s14] sm:$0xff] %v795_v22 }
 0x3ad PF: > { %s19_s30 = sadd.s32 1, %s1013_s30  }
 0x3ae   : > { %p16_p4 = scmp.ge.s32.totalorder %s19_s30, 5  }
 0x3b0   :  { %18 = sbr.rel (!%p16_p4) target bundleno = 1 (0x1), region = 86 }

</bundles_post_ra>
